<compile_context>
chip_gen: v7x
topology: tpu7x:2x2x1
jax: 0.10.0
libtpu: 0.0.40
codegen_flags: <defaults>
</compile_context>

<pallas_src>
import functools

import jax
import jax.numpy as jnp
import numpy as np
from jax.experimental import pallas as pl
from jax.experimental.pallas import tpu as pltpu

BN_EPS = 1e-5


def residual_kernel(x_ref, w_ref, gamma_ref, beta_ref, o_ref, *,
                    true_batch, bn_cols, x_cols, use_bf16):
    """relu(batchnorm1d(x @ W)) for one feature tile (optionally fused with x).

    x_ref:     (B_pad, I)             input rows (zero-padded past true_batch)
    w_ref:     (I, bn_cols)           fc weight tile (bias dropped: BN cancels it)
    gamma_ref: (1, bn_cols)           BN scale
    beta_ref:  (1, bn_cols)           BN shift
    o_ref:     (B_pad, bn_cols [+ I]) output tile; if x_cols > 0 the trailing
                                      I columns get the x passthrough (fused
                                      concat -> no wrapper copy).
    """
    x = x_ref[...]

    if use_bf16:
        # MXU peak rate is bf16; keep the f32 accumulator.
        y = jnp.dot(x.astype(jnp.bfloat16), w_ref[...].astype(jnp.bfloat16),
                    preferred_element_type=jnp.float32)
    else:
        y = jnp.dot(x, w_ref[...], preferred_element_type=jnp.float32)

    # Training-mode BatchNorm1d statistics over the TRUE batch.  Padded rows
    # of x are zero and there is no bias, so their y rows are exactly zero:
    #   - they add nothing to the sum (mean is exact with the 1/true_batch div)
    #   - each contributes exactly mean^2 to the centered sum-of-squares,
    #     which is subtracted below.
    inv_b = 1.0 / true_batch
    pad_rows = x.shape[0] - true_batch  # static Python int

    mean = jnp.sum(y, axis=0, keepdims=True) * inv_b
    centered = y - mean
    ssq = jnp.sum(centered * centered, axis=0, keepdims=True)
    if pad_rows:
        ssq = ssq - pad_rows * (mean * mean)
    var = jnp.maximum(ssq * inv_b, 0.0)

    # Fold gamma into the inverse std -> one full-size multiply in the epilogue.
    scale = gamma_ref[...] * jax.lax.rsqrt(var + BN_EPS)
    bn = jnp.maximum(centered * scale + beta_ref[...], 0.0)

    if x_cols:
        # Fused output: columns [0, bn_cols) = relu(bn), [bn_cols, bn_cols+I) = x.
        o_ref[:, :bn_cols] = bn.astype(o_ref.dtype)
        o_ref[:, bn_cols:] = x.astype(o_ref.dtype)
    else:
        o_ref[...] = bn.astype(o_ref.dtype)


def _num_feature_tiles(o):
    """1 tile on single-TC chips (v5e/v6e); 2 on v7x (one per TensorCore)."""
    if o < 256:
        return 1
    try:
        kind = jax.devices()[0].device_kind.lower()
    except Exception:
        return 1
    if "v7" in kind or "7x" in kind:
        return 2
    return 1


def residual_forward(x, w, b, gamma, beta, *, use_bf16=False):
    """Residual.forward: x (B, I); w (I, O); b/gamma/beta (O,) -> (B, O + I).

    `b` is accepted for API parity with the PyTorch module but is
    mathematically redundant (training-mode BN cancels it) and unused.
    """
    del b
    B, I = x.shape
    O = w.shape[1]

    # Pad the batch to a sublane multiple of 8 with zero rows.  Stats inside
    # the kernel use the TRUE batch size, so padding is exactly neutral.
    B_pad = ((B + 7) // 8) * 8
    x_p = jnp.pad(x, ((0, B_pad - B), (0, 0))) if B_pad != B else x

    gamma2 = gamma.reshape(1, O)
    beta2 = beta.reshape(1, O)

    n_tiles = _num_feature_tiles(O)

    if n_tiles == 1:
        # Single-step fused path (v5e/v6e and small shapes): no W padding, no
        # wrapper concat -- the kernel emits the final (B, O + I) layout.
        out = pl.pallas_call(
            functools.partial(residual_kernel, true_batch=B, bn_cols=O,
                              x_cols=I, use_bf16=use_bf16),
            out_shape=jax.ShapeDtypeStruct((B_pad, O + I), x.dtype),
            grid=(1,),
            in_specs=[
                pl.BlockSpec((B_pad, I), lambda i: (0, 0)),
                pl.BlockSpec((I, O), lambda i: (0, 0)),
                pl.BlockSpec((1, O), lambda i: (0, 0)),
                pl.BlockSpec((1, O), lambda i: (0, 0)),
            ],
            out_specs=pl.BlockSpec((B_pad, O + I), lambda i: (0, 0)),
            compiler_params=pltpu.CompilerParams(
                dimension_semantics=("arbitrary",)),
        )(x_p, w, gamma2, beta2)
        return out[:B] if B_pad != B else out

    # v7x path: split features into exactly 2 lane-aligned tiles, one per
    # TensorCore.  BN stats are per-feature so the tiles are independent.
    # TODO(synk): pre-pad W/gamma/beta once at parameter init instead of per call.
    tile_align = 128 * n_tiles
    O_pad = ((O + tile_align - 1) // tile_align) * tile_align
    if O_pad != O:
        w = jnp.pad(w, ((0, 0), (0, O_pad - O)))
        gamma2 = jnp.pad(gamma2, ((0, 0), (0, O_pad - O)))
        beta2 = jnp.pad(beta2, ((0, 0), (0, O_pad - O)))
    tn = O_pad // n_tiles

    bn_out = pl.pallas_call(
        functools.partial(residual_kernel, true_batch=B, bn_cols=tn,
                          x_cols=0, use_bf16=use_bf16),
        out_shape=jax.ShapeDtypeStruct((B_pad, O_pad), x.dtype),
        grid=(n_tiles,),
        in_specs=[
            pl.BlockSpec((B_pad, I), lambda j: (0, 0)),   # x resident
            pl.BlockSpec((I, tn), lambda j: (0, j)),      # W tile per core
            pl.BlockSpec((1, tn), lambda j: (0, j)),
            pl.BlockSpec((1, tn), lambda j: (0, j)),
        ],
        out_specs=pl.BlockSpec((B_pad, tn), lambda j: (0, j)),
        compiler_params=pltpu.CompilerParams(
            dimension_semantics=("parallel",)),           # one tile per TC
    )(x_p, w, gamma2, beta2)

    out = jnp.concatenate([bn_out[:, :O], x_p], axis=1)
    return out[:B] if B_pad != B else out


def residual_reference(x, w, b, gamma, beta):
    """Pure-JAX reference matching PyTorch Residual.forward (training-mode BN)."""
    y = x @ w + b
    mean = jnp.mean(y, axis=0, keepdims=True)
    var = jnp.mean((y - mean) ** 2, axis=0, keepdims=True)
    y = (y - mean) / jnp.sqrt(var + BN_EPS) * gamma + beta
    out = jnp.maximum(y, 0.0)
    return jnp.concatenate([out, x], axis=1)


if __name__ == "__main__":
    # Small TPU-friendly shapes: batch=8, in_features=128, out_features=256.
    B, I, O = 8, 128, 256

    key = jax.random.PRNGKey(0)
    kx, kw, kb = jax.random.split(key, 3)

    x = jax.random.normal(kx, (B, I), dtype=jnp.float32)

    # Deterministic parameter init (PyTorch Linear-style uniform bound).
    bound = 1.0 / np.sqrt(I)
    w = jax.random.uniform(kw, (I, O), dtype=jnp.float32, minval=-bound, maxval=bound)
    b = jax.random.uniform(kb, (O,), dtype=jnp.float32, minval=-bound, maxval=bound)
    gamma = jnp.ones((O,), dtype=jnp.float32)   # BatchNorm1d default weight
    beta = jnp.zeros((O,), dtype=jnp.float32)   # BatchNorm1d default bias

    out = residual_forward(x, w, b, gamma, beta, use_bf16=False)
    out = jax.block_until_ready(out)

    ref = residual_reference(x, w, b, gamma, beta)
    assert out.shape == (B, O + I), out.shape
    np.testing.assert_allclose(np.asarray(out), np.asarray(ref), atol=1e-4, rtol=1e-4)

    print("KERNEL_OK")
</pallas_src>

<mosaic_0001>
module attributes {stable_mosaic.version = 11 : i64} {
  func.func @residual_kernel(%arg0: i32, %arg1: memref<8x128xf32, #tpu.memory_space<vmem>>, %arg2: memref<128x256xf32, #tpu.memory_space<vmem>>, %arg3: memref<1x256xf32, #tpu.memory_space<vmem>>, %arg4: memref<1x256xf32, #tpu.memory_space<vmem>>, %arg5: memref<8x384xf32, #tpu.memory_space<vmem>>) attributes {dimension_semantics = [#tpu.dimension_semantics<arbitrary>], iteration_bounds = array<i64: 1>, scalar_prefetch = 0 : i64, scratch_operands = 0 : i64, tpu.core_type = #tpu.core_type<tc>, window_params = [{pipeline_mode = #tpu.pipeline_mode<synchronous>, transform_indices = @transform_0, window_bounds = array<i64: 8, 128>}, {pipeline_mode = #tpu.pipeline_mode<synchronous>, transform_indices = @transform_1, window_bounds = array<i64: 128, 256>}, {pipeline_mode = #tpu.pipeline_mode<synchronous>, transform_indices = @transform_2, window_bounds = array<i64: 1, 256>}, {pipeline_mode = #tpu.pipeline_mode<synchronous>, transform_indices = @transform_3, window_bounds = array<i64: 1, 256>}, {pipeline_mode = #tpu.pipeline_mode<synchronous>, transform_indices = @transform_4, window_bounds = array<i64: 8, 384>}]} {
    %c0 = arith.constant 0 : index
    %c0_0 = arith.constant 0 : index
    %0 = vector.load %arg1[%c0, %c0_0] : memref<8x128xf32, #tpu.memory_space<vmem>>, vector<8x128xf32>
    %c0_1 = arith.constant 0 : index
    %c0_2 = arith.constant 0 : index
    %1 = vector.load %arg2[%c0_1, %c0_2] : memref<128x256xf32, #tpu.memory_space<vmem>>, vector<128x256xf32>
    %cst = arith.constant dense<0.000000e+00> : vector<8x256xf32>
    %2 = tpu.matmul %0, %1, %cst {dimension_numbers = #tpu.dot_dimension_numbers<[1], [0], [0], [1], [0, 0, 1, 1], [], []>} : vector<8x128xf32>, vector<128x256xf32>, vector<8x256xf32> -> vector<8x256xf32>
    %cst_3 = arith.constant dense<0.000000e+00> : vector<256xf32>
    %3 = vector.multi_reduction <add>, %2, %cst_3 [0] : vector<8x256xf32> to vector<256xf32>
    %4 = vector.shape_cast %3 : vector<256xf32> to vector<1x256xf32>
    %cst_4 = arith.constant 1.250000e-01 : f32
    %5 = vector.broadcast %cst_4 : f32 to vector<1x256xf32>
    %6 = arith.mulf %4, %5 : vector<1x256xf32>
    %7 = vector.broadcast %6 : vector<1x256xf32> to vector<8x256xf32>
    %8 = arith.subf %2, %7 : vector<8x256xf32>
    %9 = arith.mulf %8, %8 : vector<8x256xf32>
    %cst_5 = arith.constant dense<0.000000e+00> : vector<256xf32>
    %10 = vector.multi_reduction <add>, %9, %cst_5 [0] : vector<8x256xf32> to vector<256xf32>
    %11 = vector.shape_cast %10 : vector<256xf32> to vector<1x256xf32>
    %cst_6 = arith.constant 1.250000e-01 : f32
    %12 = vector.broadcast %cst_6 : f32 to vector<1x256xf32>
    %13 = arith.mulf %11, %12 : vector<1x256xf32>
    %cst_7 = arith.constant 0.000000e+00 : f32
    %14 = vector.broadcast %cst_7 : f32 to vector<1x256xf32>
    %15 = arith.maximumf %13, %14 : vector<1x256xf32>
    %c0_8 = arith.constant 0 : index
    %c0_9 = arith.constant 0 : index
    %16 = vector.load %arg3[%c0_8, %c0_9] : memref<1x256xf32, #tpu.memory_space<vmem>>, vector<1x256xf32>
    %cst_10 = arith.constant 9.99999974E-6 : f32
    %17 = vector.broadcast %cst_10 : f32 to vector<1x256xf32>
    %18 = arith.addf %15, %17 : vector<1x256xf32>
    %19 = math.rsqrt %18 : vector<1x256xf32>
    %20 = arith.mulf %16, %19 : vector<1x256xf32>
    %21 = vector.broadcast %20 : vector<1x256xf32> to vector<8x256xf32>
    %22 = arith.mulf %8, %21 : vector<8x256xf32>
    %c0_11 = arith.constant 0 : index
    %c0_12 = arith.constant 0 : index
    %23 = vector.load %arg4[%c0_11, %c0_12] : memref<1x256xf32, #tpu.memory_space<vmem>>, vector<1x256xf32>
    %24 = vector.broadcast %23 : vector<1x256xf32> to vector<8x256xf32>
    %25 = arith.addf %22, %24 : vector<8x256xf32>
    %cst_13 = arith.constant 0.000000e+00 : f32
    %26 = vector.broadcast %cst_13 : f32 to vector<8x256xf32>
    %27 = arith.maximumf %25, %26 : vector<8x256xf32>
    %c0_14 = arith.constant 0 : index
    %c0_15 = arith.constant 0 : index
    %28 = vector.load %arg5[%c0_14, %c0_15] : memref<8x384xf32, #tpu.memory_space<vmem>>, vector<8x256xf32>
    tpu.vector_store %arg5[%c0_14, %c0_15], %27 {strides = array<i32>} : memref<8x384xf32, #tpu.memory_space<vmem>>, vector<8x256xf32>,
    %c0_16 = arith.constant 0 : index
    %c256 = arith.constant 256 : index
    %29 = vector.load %arg5[%c0_16, %c256] : memref<8x384xf32, #tpu.memory_space<vmem>>, vector<8x128xf32>
    tpu.vector_store %arg5[%c0_16, %c256], %0 {strides = array<i32>} : memref<8x384xf32, #tpu.memory_space<vmem>>, vector<8x128xf32>,
    return
  }
  func.func @transform_0(%arg0: i32) -> (i32, i32) {
    %c0_i32 = arith.constant 0 : i32
    %c0_i32_0 = arith.constant 0 : i32
    %c0_i32_1 = arith.constant 0 : i32
    return %c0_i32, %c0_i32_0 : i32, i32
  }
  func.func @transform_1(%arg0: i32) -> (i32, i32) {
    %c0_i32 = arith.constant 0 : i32
    %c0_i32_0 = arith.constant 0 : i32
    %c0_i32_1 = arith.constant 0 : i32
    return %c0_i32, %c0_i32_0 : i32, i32
  }
  func.func @transform_2(%arg0: i32) -> (i32, i32) {
    %c0_i32 = arith.constant 0 : i32
    %c0_i32_0 = arith.constant 0 : i32
    %c0_i32_1 = arith.constant 0 : i32
    return %c0_i32, %c0_i32_0 : i32, i32
  }
  func.func @transform_3(%arg0: i32) -> (i32, i32) {
    %c0_i32 = arith.constant 0 : i32
    %c0_i32_0 = arith.constant 0 : i32
    %c0_i32_1 = arith.constant 0 : i32
    return %c0_i32, %c0_i32_0 : i32, i32
  }
  func.func @transform_4(%arg0: i32) -> (i32, i32) {
    %c0_i32 = arith.constant 0 : i32
    %c0_i32_0 = arith.constant 0 : i32
    %c0_i32_1 = arith.constant 0 : i32
    return %c0_i32, %c0_i32_0 : i32, i32
  }
}

</mosaic_0001>

<bundles_post_ra>
// kernel: tpu_custom_call.1
= control target key start
LH: loop header
LB: loop body
LE: loop exit
PB: predicated region body
PF: predicated region fallthrough
CT: control target
= control target key end

     0   :  { %9 = vsyncpa [#allocation3], 0  ;;  %s450_s0 = inlined_call_operand.hbm [shape: f32[8,128], index: 0, kind: input, shape index: {}]   ;;  %s451_s1 = inlined_call_operand.hbm [shape: f32[128,256], index: 1, kind: input, shape index: {}]   ;;  %s452_s2 = inlined_call_operand.vmem [shape: f32[1,256], index: 2, kind: input, shape index: {}]   ;;  %s453_s3 = inlined_call_operand.vmem [shape: f32[1,256], index: 3, kind: input, shape index: {}]   ;;  %s454_s4 = inlined_call_operand.hbm [shape: f32[8,384], index: 4, kind: output, shape index: {}]  }
   0x1   :  { %10 = vsyncpa [#allocation6], 0 }
   0x2   :  { %11 = vsyncpa [#allocation4], 0  ;;  %s369_s15 = smov [#allocation2]   ;;  %s370_s17 = smov [#allocation5]  }
   0x3   :  { %s18_s16 = sshll.u32 %s369_s15, 4  ;;  %s27_s18 = sshll.u32 %s370_s17, 4  ;;  %s19_s16 = int_to_ptr.vmem [resolvable:$true] %s18_s16  ;;  %s401_s18 = int_to_ptr.vmem [resolvable:$true] %s27_s18 }
   0x4   :  { %s297_s21 = scalar_lea.hbm %s450_s0, 128 }
   0x5   :  { %p298_p0 = scmp.ne.s32.totalorder %s450_s0, %s297_s21  ;;  %p301_p1 = scmp.lt.u32.totalorder %s297_s21, %s450_s0 }
   0x7   :  { %p303_p2 = pnand %p301_p1, %p298_p0 }
   0x9   :  { %306 = shalt.err (!%p303_p2)
}
   0xa   :  { %s307_s26 = scalar_lea.vmem %s19_s16, 128  ;;  %p312_p4 = scmp.lt.s32.totalorder %s19_s16, %s19_s16 }
   0xb   :  { %p308_p3 = scmp.ne.s32.totalorder %s19_s16, %s307_s26  ;;  %p313_p5 = scmp.lt.s32.totalorder %s307_s26, %s307_s26 }
   0xd   :  { %p314_p6 = por %p313_p5, %p312_p4 }
   0xf   :  { %p315_p7 = pnand %p314_p6, %p308_p3 }
  0x11   :  { %318 = shalt.err (!%p315_p7)
}
  0x12   :  { %21 = dma.hbm_to_vmem [thread:$0]  %s450_s0, 128, %s19_s16, [#allocation3]  }
  0x13   :  { %s319_s5 = scalar_lea.hbm %s451_s1, 4096 }
  0x14   :  { %p320_p8 = scmp.ne.s32.totalorder %s451_s1, %s319_s5  ;;  %p323_p9 = scmp.lt.u32.totalorder %s319_s5, %s451_s1 }
  0x16   :  { %p325_p10 = pnand %p323_p9, %p320_p8 }
  0x18   :  { %328 = shalt.err (!%p325_p10)
}
  0x19   :  { %s329_s10 = scalar_lea.vmem %s401_s18, 4096  ;;  %p334_p12 = scmp.lt.s32.totalorder %s401_s18, %s401_s18 }
  0x1a   :  { %p330_p11 = scmp.ne.s32.totalorder %s401_s18, %s329_s10  ;;  %p335_p13 = scmp.lt.s32.totalorder %s329_s10, %s329_s10 }
  0x1c   :  { %p336_p0 = por %p335_p13, %p334_p12 }
  0x1e   :  { %p337_p1 = pnand %p336_p0, %p330_p11 }
  0x20   :  { %340 = shalt.err (!%p337_p1)
}
  0x21   :  { %s371_s0 = smov 256   ;;  %s372_s11 = smov 16  }
  0x22   :  { %33 = dma.hbm_to_vmem [thread:$0]  %s451_s1, 4096, %s401_s18, [#allocation6], %s371_s0, %s371_s0, %s372_s11  }
  0x23   :  { %363 = dma.done.wait [#allocation3], 128  }
  0x24   :  { %364 = vsyncadd [#allocation3], 4294967168 }
  0x25   :  { %365 = dma.done.wait [#allocation6], 4096  }
  0x26   :  { %366 = vsyncadd [#allocation6], 4294963200  ;;  %v373_v0 = vmov 0.0   ;;  %v46_v1 = vld [vmem:[#allocation5 + $0x8] sm:$0xff]  ;;  %v48_v2 = vld [vmem:[#allocation5 + $0x18] sm:$0xff]  ;;  %s375_s17 = smov [#allocation7]  }
  0x27   :  { %141 = vmatprep.mubr.f32.mxu0 %v373_v0  ;;  %v45_v3 = vld [vmem:[#allocation5] sm:$0xff]  ;;  %v254_v4 = vpack.c.bf16 %v48_v2, %v46_v1  ;;  %v47_v5 = vld [vmem:[#allocation5 + $0x10] sm:$0xff]  ;;  %v50_v6 = vld [vmem:[#allocation5 + $0x28] sm:$0xff]  ;;  %s244_s18 = sshll.u32 %s375_s17, 4  ;;  %s245_s18 = int_to_ptr.vmem [resolvable:$true] %s244_s18 }
  0x28   :  { %v52_v7 = vld [vmem:[#allocation5 + $0x38] sm:$0xff]  ;;  %v256_v8 = vpack.c.bf16 %v47_v5, %v45_v3  ;;  %v49_v10 = vld [vmem:[#allocation5 + $0x20] sm:$0xff]  ;;  %v51_v11 = vld [vmem:[#allocation5 + $0x30] sm:$0xff]  ;;  %p346_p3 = scmp.lt.s32.totalorder %s245_s18, %s245_s18 }
  0x29   :  { %v258_v9 = vpack.c.bf16 %v52_v7, %v50_v6  ;;  %v54_v12 = vld [vmem:[#allocation5 + $0x48] sm:$0xff]  ;;  %255 = vmatprep.subr.bf16.mxu0 %v254_v4  ;;  %v56_v13 = vld [vmem:[#allocation5 + $0x58] sm:$0xff]  ;;  %v260_v14 = vpack.c.bf16 %v51_v11, %v49_v10  ;;  %v53_v16 = vld [vmem:[#allocation5 + $0x40] sm:$0xff] }
  0x2a   :  { %257 = vmatpush1.bf16.msra.mxu0 %v256_v8  ;;  %v262_v15 = vpack.c.bf16 %v56_v13, %v54_v12  ;;  %v55_v17 = vld [vmem:[#allocation5 + $0x50] sm:$0xff]  ;;  %v58_v18 = vld [vmem:[#allocation5 + $0x68] sm:$0xff]  ;;  %v60_v19 = vld [vmem:[#allocation5 + $0x78] sm:$0xff] }
  0x2b   :  { %259 = vmatprep.subr.bf16.mxu0 %v258_v9  ;;  %v264_v20 = vpack.c.bf16 %v55_v17, %v53_v16  ;;  %v266_v21 = vpack.c.bf16 %v60_v19, %v58_v18  ;;  %v57_v22 = vld [vmem:[#allocation5 + $0x60] sm:$0xff]  ;;  %v59_v23 = vld [vmem:[#allocation5 + $0x70] sm:$0xff]  ;;  %v62_v24 = vld [vmem:[#allocation5 + $0x88] sm:$0xff] }
  0x2c   :  { %v64_v25 = vld [vmem:[#allocation5 + $0x98] sm:$0xff]  ;;  %v268_v27 = vpack.c.bf16 %v59_v23, %v57_v22  ;;  %v61_v29 = vld [vmem:[#allocation5 + $0x80] sm:$0xff]  ;;  %v63_v30 = vld [vmem:[#allocation5 + $0x90] sm:$0xff] }
  0x2d   :  { %v44_v26 = vld [vmem:[#allocation2] sm:$0xff]  ;;  %v270_v28 = vpack.c.bf16 %v64_v25, %v62_v24  ;;  %v66_v31 = vld [vmem:[#allocation5 + $0xa8] sm:$0xff]  ;;  %v272_v33 = vpack.c.bf16 %v63_v30, %v61_v29  ;;  %v65_v35 = vld [vmem:[#allocation5 + $0xa0] sm:$0xff]  ;;  %v374_v24 = vmov 1966171168  }
  0x2e   :  { %261 = vmatpush1.bf16.msra.mxu0 %v260_v14  ;;  %237 = vst [vmem:[#allocation7 + $0x10] sm:$0xff] %v44_v26  ;;  %v68_v32 = vld [vmem:[#allocation5 + $0xb8] sm:$0xff]  ;;  %v67_v36 = vld [vmem:[#allocation5 + $0xb0] sm:$0xff]  ;;  %v70_v37 = vld [vmem:[#allocation5 + $0xc8] sm:$0xff]  ;;  %v191_v25 = vunpack.c.l.s4 %v374_v24 }
  0x2f   :  { %263 = vmatprep.subr.bf16.mxu0 %v262_v15  ;;  %v274_v34 = vpack.c.bf16 %v68_v32, %v66_v31  ;;  %v72_v38 = vld [vmem:[#allocation5 + $0xd8] sm:$0xff]  ;;  %v276_v39 = vpack.c.bf16 %v67_v36, %v65_v35  ;;  %v69_v41 = vld [vmem:[#allocation5 + $0xc0] sm:$0xff]  ;;  %v71_v42 = vld [vmem:[#allocation5 + $0xd0] sm:$0xff] }
  0x30   :  { %v278_v40 = vpack.c.bf16 %v72_v38, %v70_v37  ;;  %v74_v43 = vld [vmem:[#allocation5 + $0xe8] sm:$0xff]  ;;  %v76_v44 = vld [vmem:[#allocation5 + $0xf8] sm:$0xff]  ;;  %v280_v45 = vpack.c.bf16 %v71_v42, %v69_v41  ;;  %v73_v47 = vld [vmem:[#allocation5 + $0xe0] sm:$0xff] }
  0x31   :  { %v282_v46 = vpack.c.bf16 %v76_v44, %v74_v43  ;;  %v75_v48 = vld [vmem:[#allocation5 + $0xf0] sm:$0xff]  ;;  %v219_v38 = vld [vmem:[%s453_s3] sm:$0x3] }
  0x32   :  { %265 = vmatpush1.bf16.msra.mxu0 %v264_v20  ;;  %v284_v49 = vpack.c.bf16 %v75_v48, %v73_v47 }
  0x33   :  { %267 = vmatprep.subr.bf16.mxu0 %v266_v21 }
  0x36   :  { %269 = vmatpush1.bf16.msra.mxu0 %v268_v27  ;;  %v192_v27 = vunpack.c.0.s8 %v191_v25 }
  0x37   :  { %271 = vmatprep.subr.bf16.mxu0 %v270_v28 }
  0x3a   :  { %273 = vmatpush1.bf16.msra.mxu0 %v272_v33 }
  0x3b   :  { %275 = vmatprep.subr.bf16.mxu0 %v274_v34  ;;  %v182_v34 = vld [vmem:[%s452_s2] sm:$0x3]  ;;  %s341_s2 = scalar_lea.vmem %s245_s18, 384 }
  0x3c   :  { %p342_p2 = scmp.ne.s32.totalorder %s245_s18, %s341_s2  ;;  %p347_p4 = scmp.lt.s32.totalorder %s341_s2, %s341_s2 }
  0x3e   :  { %277 = vmatpush1.bf16.msra.mxu0 %v276_v39  ;;  %p348_p5 = por %p347_p4, %p346_p3 }
  0x3f   :  { %279 = vmatprep.subr.bf16.mxu0 %v278_v40 }
  0x40   :  { %p349_p6 = pnand %p348_p5, %p342_p2 }
  0x42   :  { %281 = vmatpush1.bf16.msra.mxu0 %v280_v45 }
  0x43   :  { %283 = vmatprep.subr.bf16.mxu0 %v282_v46 }
  0x46   :  { %285 = vmatpush1.bf16.msra.mxu0 %v284_v49 }
  0x49   :  { %142 = vmatmul.mubr.f32.vlgmr.msra.gmra.mrb[0].mxu0 %v44_v26  ;;  %v193_v26 = vlaneseq }
  0x4b   :  { %v194_v28 = vshrl.u32 %v193_v26, 7 }
  0x4d   :  { %v195_v30 = vsub.s32 %v192_v27, %v194_v28  ;;  %v209_v36 = vsub.s32 0, %v194_v28  ;;  %v213_v37 = vsub.s32 1, %v194_v28 }
  0x4f   :  { %v224_v42 = vrot.slane %v219_v38, %v209_v36  ;;  %v228_v43 = vrot.slane %v219_v38, %v213_v37 }
 0x11c   :  { %v143_v50 = vpop.f32.mrb[0].mxu0 }
 0x11d   :  { %v148_v51 = vrot.slane %v143_v50, 4  ;;  %v145_v52 = vpop.f32.mrb[1].mxu0 }
 0x11e   :  { %v154_v53 = vrot.slane %v145_v52, 4 }
 0x11f   :  { %v149_v54 = vadd.f32 %v148_v51, %v143_v50 }
 0x120   :  { %v155_v55 = vadd.f32 %v154_v53, %v145_v52 }
 0x121   :  { %v150_v56 = vrot.slane %v149_v54, 2 }
 0x122   :  { %v156_v57 = vrot.slane %v155_v55, 2 }
 0x123   :  { %v151_v58 = vadd.f32 %v150_v56, %v149_v54 }
 0x124   :  { %v157_v59 = vadd.f32 %v156_v57, %v155_v55 }
 0x125   :  { %v152_v60 = vrot.slane %v151_v58, 1 }
 0x126   :  { %v158_v61 = vrot.slane %v157_v59, 1 }
 0x127   :  { %v153_v62 = vadd.f32 %v152_v60, %v151_v58 }
 0x128   :  { %v159_v63 = vadd.f32 %v158_v61, %v157_v59 }
 0x129   :  { %v160_v0 = vmul.f32 0.125, %v153_v62 }
 0x12a   :  { %v161_v1 = vmul.f32 0.125, %v159_v63 }
 0x12b   :  { %v162_v2 = vsub.f32 %v143_v50, %v160_v0 }
 0x12c   :  { %v163_v3 = vsub.f32 %v145_v52, %v161_v1 }
 0x12d   :  { %v164_v4 = vmul.f32 %v162_v2, %v162_v2 }
 0x12e   :  { %v165_v5 = vmul.f32 %v163_v3, %v163_v3 }
 0x12f   :  { %v166_v6 = vrot.slane %v164_v4, 4 }
 0x130   :  { %v172_v7 = vrot.slane %v165_v5, 4 }
 0x131   :  { %v167_v8 = vadd.f32 %v166_v6, %v164_v4 }
 0x132   :  { %v173_v9 = vadd.f32 %v172_v7, %v165_v5 }
 0x133   :  { %v168_v10 = vrot.slane %v167_v8, 2 }
 0x134   :  { %v174_v11 = vrot.slane %v173_v9, 2 }
 0x135   :  { %v169_v12 = vadd.f32 %v168_v10, %v167_v8 }
 0x136   :  { %v175_v13 = vadd.f32 %v174_v11, %v173_v9 }
 0x137   :  { %v170_v14 = vrot.slane %v169_v12, 1 }
 0x138   :  { %v176_v15 = vrot.slane %v175_v13, 1 }
 0x139   :  { %v171_v16 = vadd.f32 %v170_v14, %v169_v12 }
 0x13a   :  { %v177_v17 = vadd.f32 %v176_v15, %v175_v13 }
 0x13b   :  { %v178_v18 = vmul.f32 0.125, %v171_v16 }
 0x13c   :  { %v179_v19 = vmul.f32 0.125, %v177_v17 }
 0x13d   :  { %v180_v20 = vmax.f32 %v178_v18, 0.0 }
 0x13e   :  { %v181_v21 = vmax.f32 %v179_v19, 0.0 }
 0x13f   :  { %v183_v22 = vadd.f32 1e-05, %v180_v20 }
 0x140   :  { %v184_v23 = vadd.f32 1e-05, %v181_v21 }
 0x141   :  { %293 = vrsqrt.f32 %v183_v22 }
 0x142   :  { %295 = vrsqrt.f32 %v184_v23 }
 0x14b   :  { %v294_v29 = vpop.eup %293 }
 0x14c   :  { %v296_v31 = vpop.eup %295 }
 0x14d   :  { %v189_v32 = vcombine.low %v294_v29, %v296_v31 }
 0x14f   :  { %v196_v33 = vrot.slane %v189_v32, %v195_v30 }
 0x151   :  { %v203_v35 = vrot.slane %v196_v33, %v195_v30 }
 0x153   :  { %v205_v39 = vmul.f32 %v203_v35, %v182_v34 }
 0x155   :  { %v210_v40 = vrot.slane %v205_v39, %v209_v36  ;;  %v214_v41 = vrot.slane %v205_v39, %v213_v37 }
 0x157   :  { %v218_v44 = vmul.f32 %v214_v41, %v163_v3  ;;  %v217_v45 = vmul.f32 %v210_v40, %v162_v2 }
 0x159   :  { %v232_v46 = vadd.f32 %v228_v43, %v218_v44  ;;  %v231_v47 = vadd.f32 %v224_v42, %v217_v45 }
 0x15b   :  { %v234_v48 = vmax.f32 %v232_v46, 0.0  ;;  %v233_v49 = vmax.f32 %v231_v47, 0.0 }
 0x15d   :  { %236 = vst [vmem:[#allocation7 + $0x8] sm:$0xff] %v234_v48  ;;  %235 = vst [vmem:[#allocation7] sm:$0xff] %v233_v49 }
 0x15e   :  { %352 = shalt.err (!%p349_p6)
}
 0x15f   :  { %s353_s20 = scalar_lea.hbm %s454_s4, 384 }
 0x160   :  { %p354_p7 = scmp.ne.s32.totalorder %s454_s4, %s353_s20  ;;  %p357_p8 = scmp.lt.u32.totalorder %s353_s20, %s454_s4 }
 0x162   :  { %p359_p9 = pnand %p357_p8, %p354_p7 }
 0x164   :  { %362 = shalt.err (!%p359_p9)
}
 0x165   :  { %247 = dma.vmem_to_hbm [thread:$0]  %s245_s18, 384, %s454_s4, [#allocation4]  }
 0x166   :  { %367 = dma.done.wait [#allocation4], 384  }
 0x167   :  { %368 = vsyncadd [#allocation4], 4294966912 }
 0x168   :  { %251 = vsyncpa [#allocation3], 1 }
 0x169   :  { %252 = vsyncpa [#allocation6], 1 }
 0x16a   :  { %253 = vsyncpa [#allocation4], 1 }

</bundles_post_ra>
